<compile_context>
chip_gen: v7x
topology: tpu7x:2x2x1
jax: 0.10.0
libtpu: 0.0.40
codegen_flags: <defaults>
</compile_context>

<pallas_src>
import math

import jax
import jax.numpy as jnp
from jax.experimental import pallas as pl
from jax.experimental.pallas import tpu as pltpu


_GELU_C = math.sqrt(2.0 / math.pi)

# Below this batch size we skip the grid entirely (whole problem is one MXU
# pass + a vreg or two of VPU/EUP work; pipelining has nothing to hide).
_SMALL_B_MAX = 256
_MAX_TB = 1024
_MIN_GRID_STEPS = 8  # >= ~4 steps per TensorCore on v7x megacore split


def _language_mlp4_kernel(x_ref, w_ref, b_ref, o_ref):
    # x_ref: (TB, F), w_ref: (F, D), b_ref: (1, D), o_ref: (TB, D)
    h = jnp.dot(x_ref[...], w_ref[...], preferred_element_type=jnp.float32)
    h = h + b_ref[...]  # broadcast (1, D) over rows
    # gelu_new: 0.5 * h * (1 + tanh(sqrt(2/pi) * (h + 0.044715 * h^3)))
    # factored as h * (1 + 0.044715 * h^2) to save a VALU op / live temp.
    h2 = h * h
    t = jnp.tanh(_GELU_C * (h * (1.0 + 0.044715 * h2)))
    o_ref[...] = (0.5 * h * (1.0 + t)).astype(o_ref.dtype)


def _cost_estimate(B, F, D, out_bytes_per_elem):
    return pl.CostEstimate(
        flops=2 * B * F * D + 8 * B * D,
        transcendentals=B * D,
        bytes_accessed=4 * (B * F + F * D + D) + out_bytes_per_elem * B * D,
    )


def _choose_tile(B):
    """Pick a batch tile: multiple of 8, <= _MAX_TB, giving >= _MIN_GRID_STEPS steps."""
    tb = (B // _MIN_GRID_STEPS) // 8 * 8
    return max(8, min(_MAX_TB, tb))


def language_mlp4(lang_vector, weight, bias, *, out_dtype=jnp.float32, tb=None):
    """Forward pass of LanguageMLP4.

    lang_vector: (B, F) f32
    weight:      (D, F) f32   (torch nn.Linear layout: [out_features, in_features])
    bias:        (D,)   f32
    returns:     (B, D) out_dtype (default f32; pass jnp.bfloat16 if the
                 consumer tolerates it -- halves the dominant store traffic).
    """
    B, F = lang_vector.shape
    D, F2 = weight.shape
    assert F == F2, (F, F2)
    assert bias.shape == (D,)

    weight_t = weight.T          # (F, D): lane-dense output, layout plumbing only
    bias2d = bias.reshape(1, D)
    cost = _cost_estimate(B, F, D, jnp.dtype(out_dtype).itemsize)

    if tb is None:
        tb = 0 if B <= _SMALL_B_MAX else _choose_tile(B)

    if tb <= 0 or B <= tb:
        # Small-shape path: no grid, no pipeline — operands DMA'd once into VMEM.
        # (For production graphs at this size a plain-XLA fusion is preferable;
        #  kept here so the kernel itself is exercised.)
        return pl.pallas_call(
            _language_mlp4_kernel,
            out_shape=jax.ShapeDtypeStruct((B, D), out_dtype),
            in_specs=[
                pl.BlockSpec(memory_space=pltpu.MemorySpace.VMEM),
                pl.BlockSpec(memory_space=pltpu.MemorySpace.VMEM),
                pl.BlockSpec(memory_space=pltpu.MemorySpace.VMEM),
            ],
            out_specs=pl.BlockSpec(memory_space=pltpu.MemorySpace.VMEM),
            cost_estimate=cost,
        )(lang_vector, weight_t, bias2d)

    # ---- Tiled, pipelined path ----
    # Pad the batch up to a multiple of tb so every tile is full; padded rows
    # are computed (cheap, mem-bound) and sliced off afterwards.  This removes
    # the old "non-multiple B falls back to the un-pipelined whole-array path"
    # perf cliff / VMEM failure mode.
    n_tiles = (B + tb - 1) // tb
    Bp = n_tiles * tb
    x = lang_vector
    if Bp != B:
        x = jnp.pad(lang_vector, ((0, Bp - B), (0, 0)))

    out = pl.pallas_call(
        _language_mlp4_kernel,
        out_shape=jax.ShapeDtypeStruct((Bp, D), out_dtype),
        grid=(n_tiles,),
        in_specs=[
            pl.BlockSpec((tb, F), lambda i: (i, 0)),
            # Weight and bias: constant block index -> stay VMEM-resident
            # across the whole grid (no re-DMA per step).
            pl.BlockSpec((F, D), lambda i: (0, 0)),
            pl.BlockSpec((1, D), lambda i: (0, 0)),
        ],
        out_specs=pl.BlockSpec((tb, D), lambda i: (i, 0)),
        compiler_params=pltpu.CompilerParams(
            # Megacore sharding on v7x; measured no-op (harmless) on v5e/v6e.
            dimension_semantics=("parallel",)
        ),
        cost_estimate=cost,
    )(x, weight_t, bias2d)

    return out[:B] if Bp != B else out


def _reference(lang_vector, weight, bias):
    h = lang_vector @ weight.T + bias
    return 0.5 * h * (1.0 + jnp.tanh(_GELU_C * (h + 0.044715 * h ** 3)))


if __name__ == "__main__":
    # Shapes consistent with the module:
    #   num_language_features = 32, low_rank_dim = 128, batch = 8
    B, F, D = 8, 32, 128

    key = jax.random.PRNGKey(0)
    k_x, k_w, k_b, k_x2 = jax.random.split(key, 4)

    # Deterministic synthetic parameters (nn.Linear-style init scale).
    lang_vector = jax.random.normal(k_x, (B, F), dtype=jnp.float32)
    bound = 1.0 / math.sqrt(F)
    weight = jax.random.uniform(k_w, (D, F), minval=-bound, maxval=bound,
                                dtype=jnp.float32)   # torch layout (out, in)
    bias = jax.random.uniform(k_b, (D,), minval=-bound, maxval=bound,
                              dtype=jnp.float32)

    # ---- Small-shape (grid-less) path ----
    out = language_mlp4(lang_vector, weight, bias)
    out = jax.block_until_ready(out)
    ref = _reference(lang_vector, weight, bias)
    assert out.shape == (B, D)
    assert jnp.allclose(out, ref, atol=1e-5, rtol=1e-5), "mismatch (small path)"

    # ---- Tiled path with a non-multiple batch (exercises padding + slicing) ----
    B_big = 1000  # not a multiple of the tile -> padded to 1024, 8 grid steps
    x_big = jax.random.normal(k_x2, (B_big, F), dtype=jnp.float32)
    out_big = language_mlp4(x_big, weight, bias, tb=128)
    out_big = jax.block_until_ready(out_big)
    ref_big = _reference(x_big, weight, bias)
    assert out_big.shape == (B_big, D)
    assert jnp.allclose(out_big, ref_big, atol=1e-5, rtol=1e-5), "mismatch (tiled path)"

    print("KERNEL_OK")
</pallas_src>

<mosaic_0001>
module attributes {stable_mosaic.version = 11 : i64} {
  func.func @_language_mlp4_kernel(%arg0: memref<8x32xf32, #tpu.memory_space<vmem>>, %arg1: memref<32x128xf32, #tpu.memory_space<vmem>>, %arg2: memref<1x128xf32, #tpu.memory_space<vmem>>, %arg3: memref<8x128xf32, #tpu.memory_space<vmem>>) attributes {dimension_semantics = [], scalar_prefetch = 0 : i64, scratch_operands = 0 : i64, tpu.core_type = #tpu.core_type<tc>} {
    %c0 = arith.constant 0 : index
    %c0_0 = arith.constant 0 : index
    %0 = vector.load %arg0[%c0, %c0_0] : memref<8x32xf32, #tpu.memory_space<vmem>>, vector<8x32xf32>
    %c0_1 = arith.constant 0 : index
    %c0_2 = arith.constant 0 : index
    %1 = vector.load %arg1[%c0_1, %c0_2] : memref<32x128xf32, #tpu.memory_space<vmem>>, vector<32x128xf32>
    %cst = arith.constant dense<0.000000e+00> : vector<8x128xf32>
    %2 = tpu.matmul %0, %1, %cst {dimension_numbers = #tpu.dot_dimension_numbers<[1], [0], [0], [1], [0, 0, 1, 1], [], []>} : vector<8x32xf32>, vector<32x128xf32>, vector<8x128xf32> -> vector<8x128xf32>
    %c0_3 = arith.constant 0 : index
    %c0_4 = arith.constant 0 : index
    %3 = vector.load %arg2[%c0_3, %c0_4] : memref<1x128xf32, #tpu.memory_space<vmem>>, vector<1x128xf32>
    %4 = vector.broadcast %3 : vector<1x128xf32> to vector<8x128xf32>
    %5 = arith.addf %2, %4 : vector<8x128xf32>
    %6 = arith.mulf %5, %5 : vector<8x128xf32>
    %cst_5 = arith.constant 4.471500e-02 : f32
    %7 = vector.broadcast %cst_5 : f32 to vector<8x128xf32>
    %8 = arith.mulf %7, %6 : vector<8x128xf32>
    %cst_6 = arith.constant 1.000000e+00 : f32
    %9 = vector.broadcast %cst_6 : f32 to vector<8x128xf32>
    %10 = arith.addf %9, %8 : vector<8x128xf32>
    %11 = arith.mulf %5, %10 : vector<8x128xf32>
    %cst_7 = arith.constant 0.797884583 : f32
    %12 = vector.broadcast %cst_7 : f32 to vector<8x128xf32>
    %13 = arith.mulf %12, %11 : vector<8x128xf32>
    %14 = math.tanh %13 : vector<8x128xf32>
    %cst_8 = arith.constant 5.000000e-01 : f32
    %15 = vector.broadcast %cst_8 : f32 to vector<8x128xf32>
    %16 = arith.mulf %15, %5 : vector<8x128xf32>
    %cst_9 = arith.constant 1.000000e+00 : f32
    %17 = vector.broadcast %cst_9 : f32 to vector<8x128xf32>
    %18 = arith.addf %17, %14 : vector<8x128xf32>
    %19 = arith.mulf %16, %18 : vector<8x128xf32>
    %c0_10 = arith.constant 0 : index
    %c0_11 = arith.constant 0 : index
    %20 = vector.load %arg3[%c0_10, %c0_11] : memref<8x128xf32, #tpu.memory_space<vmem>>, vector<8x128xf32>
    tpu.vector_store %arg3[%c0_10, %c0_11], %19 {strides = array<i32>} : memref<8x128xf32, #tpu.memory_space<vmem>>, vector<8x128xf32>,
    return
  }
}

</mosaic_0001>

<bundles_post_ra>
// kernel: tpu_custom_call.1
= control target key start
LH: loop header
LB: loop body
LE: loop exit
PB: predicated region body
PF: predicated region fallthrough
CT: control target
= control target key end

     0   :  { %8 = vsyncpa [#allocation3], 0  ;;  %s333_s0 = inlined_call_operand.hbm [shape: f32[8,32], index: 0, kind: input, shape index: {}]   ;;  %s334_s1 = inlined_call_operand.hbm [shape: f32[32,128], index: 1, kind: input, shape index: {}]   ;;  %s335_s2 = inlined_call_operand.vmem [shape: f32[1,128], index: 2, kind: input, shape index: {}]   ;;  %s336_s3 = inlined_call_operand.hbm [shape: f32[8,128], index: 3, kind: output, shape index: {}]  }
   0x1   :  { %9 = vsyncpa [#allocation6], 0 }
   0x2   :  { %10 = vsyncpa [#allocation4], 0  ;;  %s259_s12 = smov [#allocation2]   ;;  %s260_s14 = smov [#allocation5]  }
   0x3   :  { %s17_s13 = sshll.u32 %s259_s12, 4  ;;  %s26_s15 = sshll.u32 %s260_s14, 4  ;;  %s18_s13 = int_to_ptr.vmem [resolvable:$true] %s17_s13  ;;  %s287_s15 = int_to_ptr.vmem [resolvable:$true] %s26_s15 }
   0x4   :  { %s187_s18 = scalar_lea.hbm %s333_s0, 128 }
   0x5   :  { %p188_p0 = scmp.ne.s32.totalorder %s333_s0, %s187_s18  ;;  %p191_p1 = scmp.lt.u32.totalorder %s187_s18, %s333_s0 }
   0x7   :  { %p193_p2 = pnand %p191_p1, %p188_p0 }
   0x9   :  { %196 = shalt.err (!%p193_p2)
}
   0xa   :  { %s197_s23 = scalar_lea.vmem %s18_s13, 128  ;;  %p202_p4 = scmp.lt.s32.totalorder %s18_s13, %s18_s13 }
   0xb   :  { %p198_p3 = scmp.ne.s32.totalorder %s18_s13, %s197_s23  ;;  %p203_p5 = scmp.lt.s32.totalorder %s197_s23, %s197_s23 }
   0xd   :  { %p204_p6 = por %p203_p5, %p202_p4 }
   0xf   :  { %p205_p7 = pnand %p204_p6, %p198_p3 }
  0x11   :  { %208 = shalt.err (!%p205_p7)
}
  0x12   :  { %20 = dma.hbm_to_vmem [thread:$0]  %s333_s0, 128, %s18_s13, [#allocation3]  }
  0x13   :  { %s209_s28 = scalar_lea.hbm %s334_s1, 512 }
  0x14   :  { %p210_p8 = scmp.ne.s32.totalorder %s334_s1, %s209_s28  ;;  %p213_p9 = scmp.lt.u32.totalorder %s209_s28, %s334_s1 }
  0x16   :  { %p215_p10 = pnand %p213_p9, %p210_p8 }
  0x18   :  { %218 = shalt.err (!%p215_p10)
}
  0x19   :  { %s219_s6 = scalar_lea.vmem %s287_s15, 512  ;;  %p224_p12 = scmp.lt.s32.totalorder %s287_s15, %s287_s15 }
  0x1a   :  { %p220_p11 = scmp.ne.s32.totalorder %s287_s15, %s219_s6  ;;  %p225_p13 = scmp.lt.s32.totalorder %s219_s6, %s219_s6 }
  0x1c   :  { %p226_p0 = por %p225_p13, %p224_p12 }
  0x1e   :  { %p227_p1 = pnand %p226_p0, %p220_p11 }
  0x20   :  { %230 = shalt.err (!%p227_p1)
}
  0x21   :  { %s261_s0 = smov 128   ;;  %s262_s7 = smov 8  }
  0x22   :  { %32 = dma.hbm_to_vmem [thread:$0]  %s334_s1, 512, %s287_s15, [#allocation6], %s261_s0, %s261_s0, %s262_s7  }
  0x23   :  { %253 = dma.done.wait [#allocation3], 128  }
  0x24   :  { %254 = vsyncadd [#allocation3], 4294967168 }
  0x25   :  { %255 = dma.done.wait [#allocation6], 512  }
  0x26   :  { %256 = vsyncadd [#allocation6], 4294966784  ;;  %v263_v0 = vmov 0.0|0.0   ;;  %vm264_vm0 = vmmov 0   ;;  %v265_v1 = vmov 0.0   ;;  %v42_v2 = vld [vmem:[#allocation5] sm:$0xff] }
  0x27   :  { %171 = vmatprep.subr.bf16.mxu0 %v263_v0  ;;  %168 = vmatprep.mubr.msk.f32.mxu0 %vm264_vm0, %v265_v1  ;;  %v43_v3 = vld [vmem:[#allocation5 + $0x8] sm:$0xff]  ;;  %v44_v4 = vld [vmem:[#allocation5 + $0x10] sm:$0xff]  ;;  %v45_v6 = vld [vmem:[#allocation5 + $0x18] sm:$0xff]  ;;  %vm53_vm1 = vcmask 261120   ;;  %s266_s11 = smov [#allocation7]  }
  0x28   :  { %v172_v5 = vpack.c.bf16 %v43_v3, %v42_v2  ;;  %v175_v7 = vpack.c.bf16 %v45_v6, %v44_v4  ;;  %v41_v8 = vld [vmem:[#allocation2] sm:$0xff]  ;;  %s143_s12 = sshll.u32 %s266_s11, 4  ;;  %s144_s12 = int_to_ptr.vmem [resolvable:$true] %s143_s12 }
  0x29   :  { %v153_v9 = vld [vmem:[%s335_s2] ss:$0 sm:$0xff]  ;;  %s231_s13 = scalar_lea.vmem %s144_s12, 128  ;;  %p236_p3 = scmp.lt.s32.totalorder %s144_s12, %s144_s12 }
  0x2a   :  { %173 = vmatpush3.bf16.msra.mxu0 %v172_v5  ;;  %p232_p2 = scmp.ne.s32.totalorder %s144_s12, %s231_s13  ;;  %p237_p4 = scmp.lt.s32.totalorder %s231_s13, %s231_s13 }
  0x2b   :  { %174 = vmatprep.subr.bf16.mxu0 %v263_v0 }
  0x2c   :  { %p238_p5 = por %p237_p4, %p236_p3 }
  0x2e   :  { %176 = vmatpush3.bf16.msra.mxu0 %v175_v7  ;;  %p239_p6 = pnand %p238_p5, %p232_p2 }
  0x31   :  { %169 = vmatmul.mubr.msk.f32.vlgmr.msra.gmra.mrb[0].mxu0 %vm53_vm1, %v41_v8 }
 0x104   :  { %v123_v10 = vpop.f32.mrb[0].mxu0 }
 0x105   :  { %v124_v11 = vadd.f32 %v153_v9, %v123_v10  ;;  %v170_v12 = vpop.f32.mrb[1].mxu0 }
 0x107   :  { %v127_v13 = vmul.f32 %v124_v11, %v124_v11  ;;  %v133_v19 = vmul.f32 0.5, %v124_v11 }
 0x109   :  { %v128_v14 = vmul.f32 0.044715, %v127_v13 }
 0x10b   :  { %v129_v15 = vadd.f32 1.0, %v128_v14 }
 0x10d   :  { %v130_v16 = vmul.f32 %v129_v15, %v124_v11 }
 0x10f   :  { %v131_v17 = vmul.f32 0.7978846, %v130_v16 }
 0x111   :  { %185 = vtanh.f32 %v131_v17 }
 0x11b   :  { %v186_v18 = vpop.eup %185 }
 0x11c   :  { %v134_v20 = vadd.f32 1.0, %v186_v18 }
 0x11e   :  { %v135_v21 = vmul.f32 %v134_v20, %v133_v19 }
 0x120   :  { %136 = vst [vmem:[#allocation7] sm:$0xff] %v135_v21 }
 0x121   :  { %242 = shalt.err (!%p239_p6)
}
 0x122   :  { %s243_s15 = scalar_lea.hbm %s336_s3, 128 }
 0x123   :  { %p244_p7 = scmp.ne.s32.totalorder %s336_s3, %s243_s15  ;;  %p247_p8 = scmp.lt.u32.totalorder %s243_s15, %s336_s3 }
 0x125   :  { %p249_p9 = pnand %p247_p8, %p244_p7 }
 0x127   :  { %252 = shalt.err (!%p249_p9)
}
 0x128   :  { %146 = dma.vmem_to_hbm [thread:$0]  %s144_s12, 128, %s336_s3, [#allocation4]  }
 0x129   :  { %257 = dma.done.wait [#allocation4], 128  }
 0x12a   :  { %258 = vsyncadd [#allocation4], 4294967168 }
 0x12b   :  { %150 = vsyncpa [#allocation3], 1 }
 0x12c   :  { %151 = vsyncpa [#allocation6], 1 }
 0x12d   :  { %152 = vsyncpa [#allocation4], 1 }

</bundles_post_ra>
